<compile_context>
chip_gen: v5e
topology: v5e:2x2
jax: 0.10.0
libtpu: 0.0.40
codegen_flags: <defaults>
</compile_context>

<pallas_src>
import jax
import jax.numpy as jnp
from jax import lax
from jax.experimental import pallas as pl
from jax.experimental.pallas import tpu as pltpu


def _round_up(x, m):
    return ((x + m - 1) // m) * m


def _mf_kernel(wd_ref, bd_ref, wc_ref, bc_ref, xd_ref, xc_ref, o_ref):
    """Fused MF tile.

    wd_ref : (O, Dd)      torch-layout drug weight        (VMEM-resident)
    bd_ref : (1, O)       drug bias                       (VMEM-resident)
    wc_ref : (O, Dc)      torch-layout cell-line weight   (VMEM-resident)
    bc_ref : (1, O)       cell-line bias                  (VMEM-resident)
    xd_ref : (TILE_B, Dd) drug-feature tile (natural layout, pipelined)
    xc_ref : (TILE_B, Dc) cell-line-feature tile
    o_ref  : (TILE_B, 1)  per-row fused dot product
    """
    # Contract over the feature dim (x dim 1 with w dim 1); no data transpose.
    dn = (((1,), (1,)), ((), ()))
    drug = lax.dot_general(xd_ref[...], wd_ref[...], dn,
                           preferred_element_type=jnp.float32) + bd_ref[...]
    cell = lax.dot_general(xc_ref[...], wc_ref[...], dn,
                           preferred_element_type=jnp.float32) + bc_ref[...]
    # Row-wise reduction over O (lane axis, XLU) -> (TILE_B, 1).
    o_ref[...] = jnp.sum(drug * cell, axis=1, keepdims=True).astype(o_ref.dtype)


def linear_mf_with_features(drug_features, cell_line_features,
                            w_drug, b_drug, w_cell, b_cell,
                            out_activation=None, tile_b=4096):
    """drug_features: (B, Dd), cell_line_features: (B, Dc),
    w_drug: (O, Dd) (torch nn.Linear layout), b_drug: (O,) or None,
    w_cell: (O, Dc), b_cell: (O,) or None.  Returns (B, 1) float32.

    Matmuls run at default MXU precision (bf16 passes, f32 accumulate); pass
    f32 inputs + precision=HIGHEST manually if bit-exact f32 is required."""
    B, Dd = drug_features.shape
    Bc, Dc = cell_line_features.shape
    assert B == Bc, "batch mismatch"
    O = w_drug.shape[0]
    assert w_drug.shape == (O, Dd) and w_cell.shape == (O, Dc)

    f32 = jnp.float32
    # Keep native dtypes; do NOT upcast (that would double HBM bytes on a
    # memory-bound kernel). Accumulation is f32 inside the kernel.
    bd = (jnp.zeros((O,), w_drug.dtype) if b_drug is None else b_drug).reshape(1, O)
    bc = (jnp.zeros((O,), w_cell.dtype) if b_cell is None else b_cell).reshape(1, O)

    # Batch tiling.
    #  * B <= SMALL_B: single block covering the whole batch (block == full
    #    dim -> no divisibility constraint, no padded/redundant rows, no
    #    pipeline machinery).
    #  * larger B: big sublane-aligned tiles, >= 2 tiles so both v7x
    #    TensorCores get work; ragged tail block handled by Pallas OOB rules
    #    (never contaminates valid rows: all ops are row-wise).
    SMALL_B = 512
    if B <= SMALL_B:
        tile = B
    else:
        tile = min(int(tile_b), _round_up(pl.cdiv(B, 2), 8))
        tile = max(8, (tile // 8) * 8)
    num_tiles = pl.cdiv(B, tile)

    x_itemsize = jnp.dtype(drug_features.dtype).itemsize
    w_itemsize = jnp.dtype(w_drug.dtype).itemsize
    flops = 2 * B * O * (Dd + Dc) + 4 * B * O
    bytes_accessed = int(x_itemsize * B * (Dd + Dc)
                         + w_itemsize * O * (Dd + Dc)
                         + 4 * (2 * O + B))

    # NOTE: for production-sized layers (large O / Dd / Dc) the VMEM-resident
    # weight blocks + feature double-buffers must be budgeted against v7x's
    # 64 MiB VMEM (set pltpu.CompilerParams(vmem_limit_bytes=...) and shrink
    # tile_b before shrinking weight residency). Test shapes here are tiny.
    out = pl.pallas_call(
        _mf_kernel,
        out_shape=jax.ShapeDtypeStruct((B, 1), f32),
        grid=(num_tiles,),
        in_specs=[
            # Weights / biases: constant index_map -> stay VMEM-resident.
            pl.BlockSpec((O, Dd), lambda i: (0, 0)),
            pl.BlockSpec((1, O), lambda i: (0, 0)),
            pl.BlockSpec((O, Dc), lambda i: (0, 0)),
            pl.BlockSpec((1, O), lambda i: (0, 0)),
            # Feature tiles in natural (B, D) layout, pipelined over batch.
            pl.BlockSpec((tile, Dd), lambda i: (i, 0)),
            pl.BlockSpec((tile, Dc), lambda i: (i, 0)),
        ],
        out_specs=pl.BlockSpec((tile, 1), lambda i: (i, 0)),
        compiler_params=pltpu.CompilerParams(
            dimension_semantics=("parallel",)),
        cost_estimate=pl.CostEstimate(flops=flops, transcendentals=0,
                                      bytes_accessed=bytes_accessed),
    )(w_drug, bd, w_cell, bc, drug_features, cell_line_features)

    if out_activation is not None:
        # TODO(synk): fold cheap activations into the kernel epilogue (EUP) if
        # this ever becomes a hot path; kept outside to match the module's
        # arbitrary-callable semantics.
        out = out_activation(out)
    return out


if __name__ == "__main__":
    # Small shapes consistent with the module.
    B = 8                 # batch (number of drug / cell-line pairs)
    DRUG_DIM = 32         # drug_input_dim
    CELL_DIM = 16         # cell_line_input_dim
    OUT_DIM = 32          # output_dim (latent factor dimension)

    key = jax.random.PRNGKey(0)
    k1, k2, k3, k4, k5, k6 = jax.random.split(key, 6)

    drug_features = jax.random.normal(k1, (B, DRUG_DIM), dtype=jnp.float32)
    cell_features = jax.random.normal(k2, (B, CELL_DIM), dtype=jnp.float32)

    # Deterministic parameter init (torch.nn.Linear layout: (out_dim, in_dim)).
    def init_linear(kw, kb, in_dim, out_dim):
        bound = 1.0 / jnp.sqrt(jnp.float32(in_dim))
        w = jax.random.uniform(kw, (out_dim, in_dim), jnp.float32, -bound, bound)
        b = jax.random.uniform(kb, (out_dim,), jnp.float32, -bound, bound)
        return w, b

    w_drug, b_drug = init_linear(k3, k4, DRUG_DIM, OUT_DIM)
    w_cell, b_cell = init_linear(k5, k6, CELL_DIM, OUT_DIM)

    def ref_fn(xd, xc):
        ref_d = xd @ w_drug.T + b_drug
        ref_c = xc @ w_cell.T + b_cell
        return jnp.sum(ref_d * ref_c, axis=1).reshape(-1, 1)

    # 1) Tiny-batch check (single-block path, no padding, no grid stepping).
    out = linear_mf_with_features(drug_features, cell_features,
                                  w_drug, b_drug, w_cell, b_cell)
    out = jax.block_until_ready(out)
    ref = ref_fn(drug_features, cell_features)
    assert out.shape == (B, 1), out.shape
    # Tolerance accommodates MXU default-precision (bf16-pass) matmuls with a
    # different accumulation order than the XLA reference.
    assert jnp.allclose(out, ref, atol=2e-2, rtol=2e-2), (
        f"max abs err {jnp.max(jnp.abs(out - ref))}")

    # 2) Multi-tile check (batch tiling + ragged last block, no wrapper pad).
    B2 = 600
    kd, kc = jax.random.split(jax.random.PRNGKey(1))
    xd2 = jax.random.normal(kd, (B2, DRUG_DIM), dtype=jnp.float32)
    xc2 = jax.random.normal(kc, (B2, CELL_DIM), dtype=jnp.float32)
    out2 = linear_mf_with_features(xd2, xc2, w_drug, b_drug, w_cell, b_cell,
                                   tile_b=256)
    out2 = jax.block_until_ready(out2)
    ref2 = ref_fn(xd2, xc2)
    assert out2.shape == (B2, 1), out2.shape
    assert jnp.allclose(out2, ref2, atol=2e-2, rtol=2e-2), (
        f"max abs err {jnp.max(jnp.abs(out2 - ref2))}")

    print("KERNEL_OK")
</pallas_src>

<mosaic_0001>
module attributes {stable_mosaic.version = 11 : i64} {
  func.func @_mf_kernel(%arg0: i32, %arg1: memref<32x32xf32, #tpu.memory_space<vmem>>, %arg2: memref<1x32xf32, #tpu.memory_space<vmem>>, %arg3: memref<32x16xf32, #tpu.memory_space<vmem>>, %arg4: memref<1x32xf32, #tpu.memory_space<vmem>>, %arg5: memref<8x32xf32, #tpu.memory_space<vmem>>, %arg6: memref<8x16xf32, #tpu.memory_space<vmem>>, %arg7: memref<8x1xf32, #tpu.memory_space<vmem>>) attributes {dimension_semantics = [#tpu.dimension_semantics<parallel>], iteration_bounds = array<i64: 1>, scalar_prefetch = 0 : i64, scratch_operands = 0 : i64, tpu.core_type = #tpu.core_type<tc>, window_params = [{pipeline_mode = #tpu.pipeline_mode<synchronous>, transform_indices = @transform_0, window_bounds = array<i64: 32, 32>}, {pipeline_mode = #tpu.pipeline_mode<synchronous>, transform_indices = @transform_1, window_bounds = array<i64: 1, 32>}, {pipeline_mode = #tpu.pipeline_mode<synchronous>, transform_indices = @transform_2, window_bounds = array<i64: 32, 16>}, {pipeline_mode = #tpu.pipeline_mode<synchronous>, transform_indices = @transform_3, window_bounds = array<i64: 1, 32>}, {transform_indices = @transform_4, window_bounds = array<i64: 8, 32>}, {transform_indices = @transform_5, window_bounds = array<i64: 8, 16>}, {transform_indices = @transform_6, window_bounds = array<i64: 8, 1>}]} {
    %c0 = arith.constant 0 : index
    %c0_0 = arith.constant 0 : index
    %0 = vector.load %arg5[%c0, %c0_0] : memref<8x32xf32, #tpu.memory_space<vmem>>, vector<8x32xf32>
    %c0_1 = arith.constant 0 : index
    %c0_2 = arith.constant 0 : index
    %1 = vector.load %arg1[%c0_1, %c0_2] : memref<32x32xf32, #tpu.memory_space<vmem>>, vector<32x32xf32>
    %cst = arith.constant dense<0.000000e+00> : vector<8x32xf32>
    %2 = tpu.matmul %0, %1, %cst {dimension_numbers = #tpu.dot_dimension_numbers<[1], [1], [0], [0], [0, 0, 1, 0], [], []>} : vector<8x32xf32>, vector<32x32xf32>, vector<8x32xf32> -> vector<8x32xf32>
    %c0_3 = arith.constant 0 : index
    %c0_4 = arith.constant 0 : index
    %3 = vector.load %arg2[%c0_3, %c0_4] : memref<1x32xf32, #tpu.memory_space<vmem>>, vector<1x32xf32>
    %4 = vector.broadcast %3 : vector<1x32xf32> to vector<8x32xf32>
    %5 = arith.addf %2, %4 : vector<8x32xf32>
    %c0_5 = arith.constant 0 : index
    %c0_6 = arith.constant 0 : index
    %6 = vector.load %arg6[%c0_5, %c0_6] : memref<8x16xf32, #tpu.memory_space<vmem>>, vector<8x16xf32>
    %c0_7 = arith.constant 0 : index
    %c0_8 = arith.constant 0 : index
    %7 = vector.load %arg3[%c0_7, %c0_8] : memref<32x16xf32, #tpu.memory_space<vmem>>, vector<32x16xf32>
    %cst_9 = arith.constant dense<0.000000e+00> : vector<8x32xf32>
    %8 = tpu.matmul %6, %7, %cst_9 {dimension_numbers = #tpu.dot_dimension_numbers<[1], [1], [0], [0], [0, 0, 1, 0], [], []>} : vector<8x16xf32>, vector<32x16xf32>, vector<8x32xf32> -> vector<8x32xf32>
    %c0_10 = arith.constant 0 : index
    %c0_11 = arith.constant 0 : index
    %9 = vector.load %arg4[%c0_10, %c0_11] : memref<1x32xf32, #tpu.memory_space<vmem>>, vector<1x32xf32>
    %10 = vector.broadcast %9 : vector<1x32xf32> to vector<8x32xf32>
    %11 = arith.addf %8, %10 : vector<8x32xf32>
    %12 = arith.mulf %5, %11 : vector<8x32xf32>
    %cst_12 = arith.constant dense<0.000000e+00> : vector<8xf32>
    %13 = vector.multi_reduction <add>, %12, %cst_12 [1] : vector<8x32xf32> to vector<8xf32>
    %14 = vector.shape_cast %13 : vector<8xf32> to vector<8x1xf32>
    %c0_13 = arith.constant 0 : index
    %c0_14 = arith.constant 0 : index
    %15 = vector.load %arg7[%c0_13, %c0_14] : memref<8x1xf32, #tpu.memory_space<vmem>>, vector<8x1xf32>
    tpu.vector_store %arg7[%c0_13, %c0_14], %14 {strides = array<i32>} : memref<8x1xf32, #tpu.memory_space<vmem>>, vector<8x1xf32>,
    return
  }
  func.func @transform_0(%arg0: i32) -> (i32, i32) {
    %c0_i32 = arith.constant 0 : i32
    %c0_i32_0 = arith.constant 0 : i32
    %c0_i32_1 = arith.constant 0 : i32
    return %c0_i32, %c0_i32_0 : i32, i32
  }
  func.func @transform_1(%arg0: i32) -> (i32, i32) {
    %c0_i32 = arith.constant 0 : i32
    %c0_i32_0 = arith.constant 0 : i32
    %c0_i32_1 = arith.constant 0 : i32
    return %c0_i32, %c0_i32_0 : i32, i32
  }
  func.func @transform_2(%arg0: i32) -> (i32, i32) {
    %c0_i32 = arith.constant 0 : i32
    %c0_i32_0 = arith.constant 0 : i32
    %c0_i32_1 = arith.constant 0 : i32
    return %c0_i32, %c0_i32_0 : i32, i32
  }
  func.func @transform_3(%arg0: i32) -> (i32, i32) {
    %c0_i32 = arith.constant 0 : i32
    %c0_i32_0 = arith.constant 0 : i32
    %c0_i32_1 = arith.constant 0 : i32
    return %c0_i32, %c0_i32_0 : i32, i32
  }
  func.func @transform_4(%arg0: i32) -> (i32, i32) {
    %c0_i32 = arith.constant 0 : i32
    %c0_i32_0 = arith.constant 0 : i32
    return %arg0, %c0_i32 : i32, i32
  }
  func.func @transform_5(%arg0: i32) -> (i32, i32) {
    %c0_i32 = arith.constant 0 : i32
    %c0_i32_0 = arith.constant 0 : i32
    return %arg0, %c0_i32 : i32, i32
  }
  func.func @transform_6(%arg0: i32) -> (i32, i32) {
    %c0_i32 = arith.constant 0 : i32
    %c0_i32_0 = arith.constant 0 : i32
    return %arg0, %c0_i32 : i32, i32
  }
}

</mosaic_0001>

<bundles_post_ra>
// kernel: tpu_custom_call.1
= control target key start
LH: loop header
LB: loop body
LE: loop exit
PB: predicated region body
PF: predicated region fallthrough
CT: control target
= control target key end

     0   :  { %11 = vsyncpa [#allocation3], 0  ;;  %s177_s24 = smov [#allocation2]   ;;  %s263_s0 = inlined_call_operand.vmem [shape: f32[32,32], index: 0, kind: input, shape index: {}]   ;;  %s264_s1 = inlined_call_operand.hbm [shape: f32[1,32], index: 1, kind: input, shape index: {}]   ;;  %s265_s2 = inlined_call_operand.vmem [shape: f32[32,16], index: 2, kind: input, shape index: {}]   ;;  %s266_s3 = inlined_call_operand.vmem [shape: f32[1,32], index: 3, kind: input, shape index: {}]   ;;  %s267_s4 = inlined_call_operand.vmem [shape: f32[8,32], index: 4, kind: input, shape index: {}]   ;;  %s268_s5 = inlined_call_operand.vmem [shape: f32[8,16], index: 5, kind: input, shape index: {}]   ;;  %s269_s6 = inlined_call_operand.vmem [shape: f32[8,1], index: 6, kind: output, shape index: {}]  }
   0x1   :  { %s19_s23 = sshll.u32 %s264_s1, 4  ;;  %s21_s25 = sshll.u32 %s177_s24, 4  ;;  %s20_s23 = int_to_ptr.hbm [resolvable:$true] %s19_s23  ;;  %s22_s25 = int_to_ptr.vmem [resolvable:$true] %s21_s25 }
   0x2   :  { %24 = dma.hbm_to_vmem [thread:$0]  %s20_s23, 16, %s22_s25, [#allocation3]  }
   0x3   :  { %175 = dma.done.wait [#allocation3], 16  }
   0x4   :  { %176 = vsyncadd [#allocation3], 4294967280  ;;  %vm46_vm0 = vcmask 261120   ;;  %vm91_vm1 = vcmask 130048   ;;  %v41_v0 = vld [vmem:[%s263_s0 + $0x18] sm:$0xff]  ;;  %v40_v2 = vld [vmem:[%s263_s0 + $0x10] sm:$0xff] }
   0x5   :  { %v86_v1 = vld [vmem:[%s265_s2 + $0x18] sm:$0xff]  ;;  %138 = vmatpush.xpose.msk.msra.mxu0 %vm46_vm0, %v41_v0  ;;  %v85_v3 = vld [vmem:[%s265_s2 + $0x10] sm:$0xff]  ;;  %v39_v4 = vld [vmem:[%s263_s0 + $0x8] sm:$0xff]  ;;  %vm131_vm2 = vcmask 7168  }
   0x6   :  { %143 = vmatpush.xpose.msk.msra.mxu1 %vm91_vm1, %v86_v1  ;;  %v84_v5 = vld [vmem:[%s265_s2 + $0x8] sm:$0xff]  ;;  %v38_v6 = vld [vmem:[%s263_s0] sm:$0xff] }
   0x7   :  { %v83_v7 = vld [vmem:[%s265_s2] sm:$0xff] }
   0x8   :  { %v37_v8 = vld [vmem:[%s267_s4] sm:$0xff] }
   0x9   :  { %139 = vmatpush.xpose.msk.msra.mxu0 %vm46_vm0, %v40_v2  ;;  %v82_v9 = vld [vmem:[%s268_s5] sm:$0xff] }
   0xa   :  { %144 = vmatpush.xpose.msk.msra.mxu1 %vm91_vm1, %v85_v3  ;;  %v149_v10 = vld [vmem:[#allocation2] ss:$0 sm:$0xff] }
   0xb   :  { %v150_v11 = vld [vmem:[%s266_s3] ss:$0 sm:$0xff] }
   0xd   :  { %140 = vmatpush.xpose.msk.msra.mxu0 %vm46_vm0, %v39_v4 }
   0xe   :  { %145 = vmatpush.xpose.msk.msra.mxu1 %vm91_vm1, %v84_v5 }
  0x11   :  { %141 = vmatpush.xpose.msk.msra.mxu0 %vm46_vm0, %v38_v6 }
  0x12   :  { %146 = vmatpush.xpose.msk.msra.mxu1 %vm91_vm1, %v83_v7 }
  0x14   :  { %142 = vmatmul.msk.f32.vlgmr.msra.gmra.mxu0 %vm46_vm0, %v37_v8 }
  0x15   :  { %147 = vmatmul.msk.f32.vlgmr.msra.gmra.mxu1 %vm91_vm1, %v82_v9 }
  0x91   :  { %v79_v12 = vpop.f32.mrf.mxu0 }
  0x92   :  { %v124_v13 = vpop.f32.mrf.mxu1  ;;  %v80_v14 = vadd.f32 %v149_v10, %v79_v12 }
  0x93   :  { %v125_v15 = vadd.f32 %v150_v11, %v124_v13 }
  0x95   :  { %v127_v16 = vmul.f32 %v125_v15, %v80_v14 }
  0x97   :  { %v128_v17 = vsel %vm46_vm0, %v127_v16, 0.0 }
  0x98   :  { %129 = vadd.xlane.f32.xlu0 %v128_v17 }
 0x10b   :  { %v130_v18 = vpop.xlane.xlu0 %129 }
 0x10c   :  { %132 = vst.msk [vmem:[%s269_s6] sm:$0xff] %vm131_vm2, %v130_v18 }
 0x10d   :  { %137 = vsyncpa [#allocation3], 1 }

</bundles_post_ra>
